<compile_context>
chip_gen: v7x
topology: tpu7x:2x2x1
jax: 0.10.0
libtpu: 0.0.40
codegen_flags: <defaults>
</compile_context>

<pallas_src>
import jax
import jax.numpy as jnp
from jax.experimental import pallas as pl
from jax.experimental.pallas import tpu as pltpu


# ------------------------------ fused kernel -------------------------------

def _encoder_block_kernel(xp_ref, w1_ref, s1_ref, b1_ref,
                          w2_ref, s2_ref, b2_ref, out_ref, hpad_ref):
    # xp_ref : (B, L+2, Cin)  channels-last input, already zero-padded along L
    # w1_ref : (3, Cin, Cmid) conv1 weights, one (Cin, Cmid) matrix per tap
    # w2_ref : (3, Cmid, Cout)
    # s*/b*  : (1, C)         folded BatchNorm scale / bias
    # out_ref: (B, L, Cout)
    # hpad_ref: (B, L+2, Cmid) VMEM scratch (zero-padded conv2 input)
    B, Lp2, Cin = xp_ref.shape
    L = Lp2 - 2
    Cmid = w1_ref.shape[2]
    Cout = w2_ref.shape[2]

    # Center slice of the input: conv1 tap k=1 AND the residual identity.
    x_c = xp_ref[:, 1:L + 1, :]                       # (B, L, Cin)

    # ---- conv1: 3 shifted (B*L, Cin) @ (Cin, Cmid) MXU matmuls ------------
    h = jnp.dot(xp_ref[:, 0:L, :].reshape(B * L, Cin), w1_ref[0],
                preferred_element_type=jnp.float32)
    h = h + jnp.dot(x_c.reshape(B * L, Cin), w1_ref[1],
                    preferred_element_type=jnp.float32)
    h = h + jnp.dot(xp_ref[:, 2:L + 2, :].reshape(B * L, Cin), w1_ref[2],
                    preferred_element_type=jnp.float32)

    # ---- bn1 (folded scale/bias) + relu -----------------------------------
    h = jnp.maximum(h * s1_ref[...] + b1_ref[...], 0.0)

    # ---- stage into zero-padded VMEM scratch for conv2 --------------------
    zrow = jnp.zeros((B, 1, Cmid), jnp.float32)
    hpad_ref[:, 0:1, :] = zrow
    hpad_ref[:, L + 1:L + 2, :] = zrow
    hpad_ref[:, 1:L + 1, :] = h.reshape(B, L, Cmid)

    # ---- conv2: 3 shifted (B*L, Cmid) @ (Cmid, Cout) MXU matmuls ----------
    o = jnp.dot(hpad_ref[:, 0:L, :].reshape(B * L, Cmid), w2_ref[0],
                preferred_element_type=jnp.float32)
    o = o + jnp.dot(hpad_ref[:, 1:L + 1, :].reshape(B * L, Cmid), w2_ref[1],
                    preferred_element_type=jnp.float32)
    o = o + jnp.dot(hpad_ref[:, 2:L + 2, :].reshape(B * L, Cmid), w2_ref[2],
                    preferred_element_type=jnp.float32)

    # ---- bn2 + residual + relu --------------------------------------------
    o = o * s2_ref[...] + b2_ref[...]
    identity = x_c.reshape(B * L, Cout)               # Cin == Cout
    out_ref[...] = jnp.maximum(o + identity, 0.0).reshape(B, L, Cout)


# ------------------------------ host wrapper -------------------------------

def encoder_block_forward(x, params):
    """x: (B, C_in, L) PyTorch Conv1d layout.  Returns (B, C_out, L)."""
    B, Cin, L = x.shape
    w1 = params["conv1_w"]        # (Cmid, Cin, 3)
    w2 = params["conv2_w"]        # (Cout, Cmid, 3)
    Cmid = w1.shape[0]
    Cout = w2.shape[0]
    assert Cin == Cout, "downsample=None requires inplanes == planes"

    # Fold BatchNorm (inference mode) into per-channel scale/bias.
    eps = 1e-5
    s1 = params["bn1_gamma"] * jax.lax.rsqrt(params["bn1_var"] + eps)
    b1 = params["bn1_beta"] - params["bn1_mean"] * s1
    s2 = params["bn2_gamma"] * jax.lax.rsqrt(params["bn2_var"] + eps)
    b2 = params["bn2_beta"] - params["bn2_mean"] * s2

    # Channels-last for lane density; pad L by 1 each side once on the host.
    x_pad = jnp.pad(jnp.transpose(x, (0, 2, 1)), ((0, 0), (1, 1), (0, 0)))

    # (Co, Ci, K) -> (K, Ci, Co): one (Ci, Co) matmul operand per tap.
    w1_t = jnp.transpose(w1, (2, 1, 0)).astype(jnp.float32)
    w2_t = jnp.transpose(w2, (2, 1, 0)).astype(jnp.float32)

    out_cl = pl.pallas_call(
        _encoder_block_kernel,
        out_shape=jax.ShapeDtypeStruct((B, L, Cout), jnp.float32),
        in_specs=[
            pl.BlockSpec((B, L + 2, Cin), lambda: (0, 0, 0)),
            pl.BlockSpec((3, Cin, Cmid), lambda: (0, 0, 0)),
            pl.BlockSpec((1, Cmid), lambda: (0, 0)),
            pl.BlockSpec((1, Cmid), lambda: (0, 0)),
            pl.BlockSpec((3, Cmid, Cout), lambda: (0, 0, 0)),
            pl.BlockSpec((1, Cout), lambda: (0, 0)),
            pl.BlockSpec((1, Cout), lambda: (0, 0)),
        ],
        out_specs=pl.BlockSpec((B, L, Cout), lambda: (0, 0, 0)),
        scratch_shapes=[pltpu.VMEM((B, L + 2, Cmid), jnp.float32)],
    )(x_pad.astype(jnp.float32),
      w1_t, s1.reshape(1, Cmid), b1.reshape(1, Cmid),
      w2_t, s2.reshape(1, Cout), b2.reshape(1, Cout))

    return jnp.transpose(out_cl, (0, 2, 1))           # back to (B, C, L)


# ------------------------- pure-JAX reference check ------------------------

def _conv1d_ref(x, w):
    # x: (B, Ci, L), w: (Co, Ci, 3), stride=1, padding=1, bias=False
    L = x.shape[2]
    xp = jnp.pad(x, ((0, 0), (0, 0), (1, 1)))
    out = jnp.zeros((x.shape[0], w.shape[0], L), jnp.float32)
    for k in range(3):
        out = out + jnp.einsum("bcl,oc->bol", xp[:, :, k:k + L], w[:, :, k],
                               precision=jax.lax.Precision.HIGHEST)
    return out


def _bn_ref(x, gamma, beta, mean, var, eps=1e-5):
    s = gamma * jax.lax.rsqrt(var + eps)
    b = beta - mean * s
    return x * s[None, :, None] + b[None, :, None]


def _ref_forward(x, params):
    out = _conv1d_ref(x, params["conv1_w"])
    out = jnp.maximum(_bn_ref(out, params["bn1_gamma"], params["bn1_beta"],
                              params["bn1_mean"], params["bn1_var"]), 0.0)
    out = _conv1d_ref(out, params["conv2_w"])
    out = _bn_ref(out, params["bn2_gamma"], params["bn2_beta"],
                  params["bn2_mean"], params["bn2_var"])
    return jnp.maximum(out + x, 0.0)


# ---------------------------------- main -----------------------------------

if __name__ == "__main__":
    key = jax.random.PRNGKey(0)
    B, C, L = 2, 128, 16        # batch, channels (inplanes == planes), length
                                # C = 128 keeps every lane dense on the TPU.

    keys = jax.random.split(key, 11)
    params = {
        "conv1_w": 0.1 * jax.random.normal(keys[0], (C, C, 3), jnp.float32),
        "bn1_gamma": 1.0 + 0.1 * jax.random.normal(keys[1], (C,), jnp.float32),
        "bn1_beta": 0.1 * jax.random.normal(keys[2], (C,), jnp.float32),
        "bn1_mean": 0.1 * jax.random.normal(keys[3], (C,), jnp.float32),
        "bn1_var": jnp.abs(1.0 + 0.1 * jax.random.normal(keys[4], (C,), jnp.float32)),
        "conv2_w": 0.1 * jax.random.normal(keys[5], (C, C, 3), jnp.float32),
        "bn2_gamma": 1.0 + 0.1 * jax.random.normal(keys[6], (C,), jnp.float32),
        "bn2_beta": 0.1 * jax.random.normal(keys[7], (C,), jnp.float32),
        "bn2_mean": 0.1 * jax.random.normal(keys[8], (C,), jnp.float32),
        "bn2_var": jnp.abs(1.0 + 0.1 * jax.random.normal(keys[9], (C,), jnp.float32)),
    }
    x = jax.random.normal(keys[10], (B, C, L), jnp.float32)

    out = encoder_block_forward(x, params)
    out = jax.block_until_ready(out)

    ref = _ref_forward(x, params)
    assert out.shape == (B, C, L)
    assert jnp.allclose(out, ref, atol=1e-3, rtol=1e-3), "mismatch vs reference"

    print("KERNEL_OK")
</pallas_src>

<mosaic_0001>
module attributes {stable_mosaic.version = 11 : i64} {
  func.func @_encoder_block_kernel(%arg0: memref<2x18x128xf32, #tpu.memory_space<vmem>>, %arg1: memref<3x128x128xf32, #tpu.memory_space<vmem>>, %arg2: memref<1x128xf32, #tpu.memory_space<vmem>>, %arg3: memref<1x128xf32, #tpu.memory_space<vmem>>, %arg4: memref<3x128x128xf32, #tpu.memory_space<vmem>>, %arg5: memref<1x128xf32, #tpu.memory_space<vmem>>, %arg6: memref<1x128xf32, #tpu.memory_space<vmem>>, %arg7: memref<2x16x128xf32, #tpu.memory_space<vmem>>, %arg8: memref<2x18x128xf32, #tpu.memory_space<vmem>>) attributes {dimension_semantics = [], scalar_prefetch = 0 : i64, scratch_operands = 1 : i64, tpu.core_type = #tpu.core_type<tc>} {
    %c0 = arith.constant 0 : index
    %c1 = arith.constant 1 : index
    %c0_0 = arith.constant 0 : index
    %0 = vector.load %arg0[%c0, %c1, %c0_0] : memref<2x18x128xf32, #tpu.memory_space<vmem>>, vector<2x16x128xf32>
    %c0_1 = arith.constant 0 : index
    %c0_2 = arith.constant 0 : index
    %c0_3 = arith.constant 0 : index
    %1 = vector.load %arg0[%c0_1, %c0_2, %c0_3] : memref<2x18x128xf32, #tpu.memory_space<vmem>>, vector<2x16x128xf32>
    %2 = vector.shape_cast %1 : vector<2x16x128xf32> to vector<32x128xf32>
    %c0_4 = arith.constant 0 : index
    %c0_5 = arith.constant 0 : index
    %c0_6 = arith.constant 0 : index
    %3 = vector.load %arg1[%c0_4, %c0_5, %c0_6] : memref<3x128x128xf32, #tpu.memory_space<vmem>>, vector<1x128x128xf32>
    %4 = vector.shape_cast %3 : vector<1x128x128xf32> to vector<128x128xf32>
    %cst = arith.constant dense<0.000000e+00> : vector<32x128xf32>
    %5 = tpu.matmul %2, %4, %cst {dimension_numbers = #tpu.dot_dimension_numbers<[1], [0], [0], [1], [0, 0, 1, 1], [], []>} : vector<32x128xf32>, vector<128x128xf32>, vector<32x128xf32> -> vector<32x128xf32>
    %6 = vector.shape_cast %0 : vector<2x16x128xf32> to vector<32x128xf32>
    %c1_7 = arith.constant 1 : index
    %c0_8 = arith.constant 0 : index
    %c0_9 = arith.constant 0 : index
    %7 = vector.load %arg1[%c1_7, %c0_8, %c0_9] : memref<3x128x128xf32, #tpu.memory_space<vmem>>, vector<1x128x128xf32>
    %8 = vector.shape_cast %7 : vector<1x128x128xf32> to vector<128x128xf32>
    %cst_10 = arith.constant dense<0.000000e+00> : vector<32x128xf32>
    %9 = tpu.matmul %6, %8, %cst_10 {dimension_numbers = #tpu.dot_dimension_numbers<[1], [0], [0], [1], [0, 0, 1, 1], [], []>} : vector<32x128xf32>, vector<128x128xf32>, vector<32x128xf32> -> vector<32x128xf32>
    %10 = arith.addf %5, %9 : vector<32x128xf32>
    %c0_11 = arith.constant 0 : index
    %c2 = arith.constant 2 : index
    %c0_12 = arith.constant 0 : index
    %11 = vector.load %arg0[%c0_11, %c2, %c0_12] : memref<2x18x128xf32, #tpu.memory_space<vmem>>, vector<2x16x128xf32>
    %12 = vector.shape_cast %11 : vector<2x16x128xf32> to vector<32x128xf32>
    %c2_13 = arith.constant 2 : index
    %c0_14 = arith.constant 0 : index
    %c0_15 = arith.constant 0 : index
    %13 = vector.load %arg1[%c2_13, %c0_14, %c0_15] : memref<3x128x128xf32, #tpu.memory_space<vmem>>, vector<1x128x128xf32>
    %14 = vector.shape_cast %13 : vector<1x128x128xf32> to vector<128x128xf32>
    %cst_16 = arith.constant dense<0.000000e+00> : vector<32x128xf32>
    %15 = tpu.matmul %12, %14, %cst_16 {dimension_numbers = #tpu.dot_dimension_numbers<[1], [0], [0], [1], [0, 0, 1, 1], [], []>} : vector<32x128xf32>, vector<128x128xf32>, vector<32x128xf32> -> vector<32x128xf32>
    %16 = arith.addf %10, %15 : vector<32x128xf32>
    %c0_17 = arith.constant 0 : index
    %c0_18 = arith.constant 0 : index
    %17 = vector.load %arg2[%c0_17, %c0_18] : memref<1x128xf32, #tpu.memory_space<vmem>>, vector<1x128xf32>
    %18 = vector.broadcast %17 : vector<1x128xf32> to vector<32x128xf32>
    %19 = arith.mulf %16, %18 : vector<32x128xf32>
    %c0_19 = arith.constant 0 : index
    %c0_20 = arith.constant 0 : index
    %20 = vector.load %arg3[%c0_19, %c0_20] : memref<1x128xf32, #tpu.memory_space<vmem>>, vector<1x128xf32>
    %21 = vector.broadcast %20 : vector<1x128xf32> to vector<32x128xf32>
    %22 = arith.addf %19, %21 : vector<32x128xf32>
    %cst_21 = arith.constant 0.000000e+00 : f32
    %23 = vector.broadcast %cst_21 : f32 to vector<32x128xf32>
    %24 = arith.maximumf %22, %23 : vector<32x128xf32>
    %cst_22 = arith.constant 0.000000e+00 : f32
    %25 = vector.broadcast %cst_22 : f32 to vector<2x1x128xf32>
    %c0_23 = arith.constant 0 : index
    %c0_24 = arith.constant 0 : index
    %c0_25 = arith.constant 0 : index
    %26 = vector.load %arg8[%c0_23, %c0_24, %c0_25] : memref<2x18x128xf32, #tpu.memory_space<vmem>>, vector<2x1x128xf32>
    tpu.vector_store %arg8[%c0_23, %c0_24, %c0_25], %25 {strides = array<i32>} : memref<2x18x128xf32, #tpu.memory_space<vmem>>, vector<2x1x128xf32>,
    %c0_26 = arith.constant 0 : index
    %c17 = arith.constant 17 : index
    %c0_27 = arith.constant 0 : index
    %27 = vector.load %arg8[%c0_26, %c17, %c0_27] : memref<2x18x128xf32, #tpu.memory_space<vmem>>, vector<2x1x128xf32>
    tpu.vector_store %arg8[%c0_26, %c17, %c0_27], %25 {strides = array<i32>} : memref<2x18x128xf32, #tpu.memory_space<vmem>>, vector<2x1x128xf32>,
    %28 = vector.shape_cast %24 : vector<32x128xf32> to vector<2x16x128xf32>
    %c0_28 = arith.constant 0 : index
    %c1_29 = arith.constant 1 : index
    %c0_30 = arith.constant 0 : index
    %29 = vector.load %arg8[%c0_28, %c1_29, %c0_30] : memref<2x18x128xf32, #tpu.memory_space<vmem>>, vector<2x16x128xf32>
    tpu.vector_store %arg8[%c0_28, %c1_29, %c0_30], %28 {strides = array<i32>} : memref<2x18x128xf32, #tpu.memory_space<vmem>>, vector<2x16x128xf32>,
    %c0_31 = arith.constant 0 : index
    %c0_32 = arith.constant 0 : index
    %c0_33 = arith.constant 0 : index
    %30 = vector.load %arg8[%c0_31, %c0_32, %c0_33] : memref<2x18x128xf32, #tpu.memory_space<vmem>>, vector<2x16x128xf32>
    %31 = vector.shape_cast %30 : vector<2x16x128xf32> to vector<32x128xf32>
    %c0_34 = arith.constant 0 : index
    %c0_35 = arith.constant 0 : index
    %c0_36 = arith.constant 0 : index
    %32 = vector.load %arg4[%c0_34, %c0_35, %c0_36] : memref<3x128x128xf32, #tpu.memory_space<vmem>>, vector<1x128x128xf32>
    %33 = vector.shape_cast %32 : vector<1x128x128xf32> to vector<128x128xf32>
    %cst_37 = arith.constant dense<0.000000e+00> : vector<32x128xf32>
    %34 = tpu.matmul %31, %33, %cst_37 {dimension_numbers = #tpu.dot_dimension_numbers<[1], [0], [0], [1], [0, 0, 1, 1], [], []>} : vector<32x128xf32>, vector<128x128xf32>, vector<32x128xf32> -> vector<32x128xf32>
    %c0_38 = arith.constant 0 : index
    %c1_39 = arith.constant 1 : index
    %c0_40 = arith.constant 0 : index
    %35 = vector.load %arg8[%c0_38, %c1_39, %c0_40] : memref<2x18x128xf32, #tpu.memory_space<vmem>>, vector<2x16x128xf32>
    %36 = vector.shape_cast %35 : vector<2x16x128xf32> to vector<32x128xf32>
    %c1_41 = arith.constant 1 : index
    %c0_42 = arith.constant 0 : index
    %c0_43 = arith.constant 0 : index
    %37 = vector.load %arg4[%c1_41, %c0_42, %c0_43] : memref<3x128x128xf32, #tpu.memory_space<vmem>>, vector<1x128x128xf32>
    %38 = vector.shape_cast %37 : vector<1x128x128xf32> to vector<128x128xf32>
    %cst_44 = arith.constant dense<0.000000e+00> : vector<32x128xf32>
    %39 = tpu.matmul %36, %38, %cst_44 {dimension_numbers = #tpu.dot_dimension_numbers<[1], [0], [0], [1], [0, 0, 1, 1], [], []>} : vector<32x128xf32>, vector<128x128xf32>, vector<32x128xf32> -> vector<32x128xf32>
    %40 = arith.addf %34, %39 : vector<32x128xf32>
    %c0_45 = arith.constant 0 : index
    %c2_46 = arith.constant 2 : index
    %c0_47 = arith.constant 0 : index
    %41 = vector.load %arg8[%c0_45, %c2_46, %c0_47] : memref<2x18x128xf32, #tpu.memory_space<vmem>>, vector<2x16x128xf32>
    %42 = vector.shape_cast %41 : vector<2x16x128xf32> to vector<32x128xf32>
    %c2_48 = arith.constant 2 : index
    %c0_49 = arith.constant 0 : index
    %c0_50 = arith.constant 0 : index
    %43 = vector.load %arg4[%c2_48, %c0_49, %c0_50] : memref<3x128x128xf32, #tpu.memory_space<vmem>>, vector<1x128x128xf32>
    %44 = vector.shape_cast %43 : vector<1x128x128xf32> to vector<128x128xf32>
    %cst_51 = arith.constant dense<0.000000e+00> : vector<32x128xf32>
    %45 = tpu.matmul %42, %44, %cst_51 {dimension_numbers = #tpu.dot_dimension_numbers<[1], [0], [0], [1], [0, 0, 1, 1], [], []>} : vector<32x128xf32>, vector<128x128xf32>, vector<32x128xf32> -> vector<32x128xf32>
    %46 = arith.addf %40, %45 : vector<32x128xf32>
    %c0_52 = arith.constant 0 : index
    %c0_53 = arith.constant 0 : index
    %47 = vector.load %arg5[%c0_52, %c0_53] : memref<1x128xf32, #tpu.memory_space<vmem>>, vector<1x128xf32>
    %48 = vector.broadcast %47 : vector<1x128xf32> to vector<32x128xf32>
    %49 = arith.mulf %46, %48 : vector<32x128xf32>
    %c0_54 = arith.constant 0 : index
    %c0_55 = arith.constant 0 : index
    %50 = vector.load %arg6[%c0_54, %c0_55] : memref<1x128xf32, #tpu.memory_space<vmem>>, vector<1x128xf32>
    %51 = vector.broadcast %50 : vector<1x128xf32> to vector<32x128xf32>
    %52 = arith.addf %49, %51 : vector<32x128xf32>
    %53 = vector.shape_cast %0 : vector<2x16x128xf32> to vector<32x128xf32>
    %54 = arith.addf %52, %53 : vector<32x128xf32>
    %cst_56 = arith.constant 0.000000e+00 : f32
    %55 = vector.broadcast %cst_56 : f32 to vector<32x128xf32>
    %56 = arith.maximumf %54, %55 : vector<32x128xf32>
    %57 = vector.shape_cast %56 : vector<32x128xf32> to vector<2x16x128xf32>
    %c0_57 = arith.constant 0 : index
    %c0_58 = arith.constant 0 : index
    %c0_59 = arith.constant 0 : index
    %58 = vector.load %arg7[%c0_57, %c0_58, %c0_59] : memref<2x16x128xf32, #tpu.memory_space<vmem>>, vector<2x16x128xf32>
    tpu.vector_store %arg7[%c0_57, %c0_58, %c0_59], %57 {strides = array<i32>} : memref<2x16x128xf32, #tpu.memory_space<vmem>>, vector<2x16x128xf32>,
    return
  }
}

</mosaic_0001>

<bundles_post_ra>
// kernel: tpu_custom_call.1
= control target key start
LH: loop header
LB: loop body
LE: loop exit
PB: predicated region body
PF: predicated region fallthrough
CT: control target
= control target key end

     0   :  { %12 = vsyncpa [#allocation4], 0  ;;  %s1576_s0 = inlined_call_operand.vmem [shape: f32[2,18,128], index: 0, kind: input, shape index: {}]   ;;  %s1577_s1 = inlined_call_operand.hbm [shape: f32[3,128,128], index: 1, kind: input, shape index: {}]   ;;  %s1578_s2 = inlined_call_operand.vmem [shape: f32[1,128], index: 2, kind: input, shape index: {}]   ;;  %s1579_s3 = inlined_call_operand.vmem [shape: f32[1,128], index: 3, kind: input, shape index: {}]   ;;  %s1580_s4 = inlined_call_operand.hbm [shape: f32[3,128,128], index: 4, kind: input, shape index: {}]   ;;  %s1581_s5 = inlined_call_operand.vmem [shape: f32[1,128], index: 5, kind: input, shape index: {}]   ;;  %s1582_s6 = inlined_call_operand.vmem [shape: f32[1,128], index: 6, kind: input, shape index: {}]   ;;  %s1583_s7 = inlined_call_operand.hbm [shape: f32[2,16,128], index: 7, kind: output, shape index: {}]  }
   0x1   :  { %13 = vsyncpa [#allocation7], 0 }
   0x2   :  { %14 = vsyncpa [#allocation5], 0  ;;  %s1421_s24 = smov [#allocation3]   ;;  %s1349_s28 = scalar_lea.hbm %s1577_s1, 6144 }
   0x3   :  { %s22_s25 = sshll.u32 %s1421_s24, 4  ;;  %p1350_p0 = scmp.ne.s32.totalorder %s1577_s1, %s1349_s28  ;;  %s23_s25 = int_to_ptr.vmem [resolvable:$true] %s22_s25 }
   0x4   :  { %p1353_p1 = scmp.lt.u32.totalorder %s1349_s28, %s1577_s1 }
   0x6   :  { %p1355_p2 = pnand %p1353_p1, %p1350_p0 }
   0x8   :  { %1358 = shalt.err (!%p1355_p2)
}
   0x9   :  { %s1359_s10 = scalar_lea.vmem %s23_s25, 6144  ;;  %p1364_p4 = scmp.lt.s32.totalorder %s23_s25, %s23_s25 }
   0xa   :  { %p1360_p3 = scmp.ne.s32.totalorder %s23_s25, %s1359_s10  ;;  %p1365_p5 = scmp.lt.s32.totalorder %s1359_s10, %s1359_s10 }
   0xc   :  { %p1366_p6 = por %p1365_p5, %p1364_p4 }
   0xe   :  { %p1367_p7 = pnand %p1366_p6, %p1360_p3 }
  0x10   :  { %1370 = shalt.err (!%p1367_p7)
}
  0x11   :  { %s1422_s11 = smov 128   ;;  %s1423_s12 = smov 8  }
  0x12   :  { %28 = dma.hbm_to_vmem [thread:$0]  %s1577_s1, 6144, %s23_s25, [#allocation4], %s1422_s11, %s1422_s11, %s1423_s12  }
  0x13   :  { %s1424_s15 = smov [#allocation6]   ;;  %s1371_s19 = scalar_lea.hbm %s1580_s4, 6144 }
  0x14   :  { %s38_s16 = sshll.u32 %s1424_s15, 4  ;;  %p1372_p8 = scmp.ne.s32.totalorder %s1580_s4, %s1371_s19  ;;  %s39_s16 = int_to_ptr.vmem [resolvable:$true] %s38_s16 }
  0x15   :  { %p1375_p9 = scmp.lt.u32.totalorder %s1371_s19, %s1580_s4 }
  0x17   :  { %p1377_p10 = pnand %p1375_p9, %p1372_p8 }
  0x19   :  { %1380 = shalt.err (!%p1377_p10)
}
  0x1a   :  { %s1381_s24 = scalar_lea.vmem %s39_s16, 6144  ;;  %p1386_p12 = scmp.lt.s32.totalorder %s39_s16, %s39_s16 }
  0x1b   :  { %p1382_p11 = scmp.ne.s32.totalorder %s39_s16, %s1381_s24  ;;  %p1387_p13 = scmp.lt.s32.totalorder %s1381_s24, %s1381_s24 }
  0x1d   :  { %p1388_p0 = por %p1387_p13, %p1386_p12 }
  0x1f   :  { %p1389_p1 = pnand %p1388_p0, %p1382_p11 }
  0x21   :  { %1392 = shalt.err (!%p1389_p1)
}
  0x22   :  { %44 = dma.hbm_to_vmem [thread:$0]  %s1580_s4, 6144, %s39_s16, [#allocation7], %s1422_s11, %s1422_s11, %s1423_s12  }
  0x23   :  { %1415 = dma.done.wait [#allocation4], 6144  }
  0x24   :  { %1416 = vsyncadd [#allocation4], 4294961152 }
  0x25   :  { %1417 = dma.done.wait [#allocation7], 6144  }
  0x26   :  { %1418 = vsyncadd [#allocation7], 4294961152  ;;  %v80_v0 = vld [vmem:[#allocation3 + $0x80] sm:$0xff]  ;;  %v81_v1 = vld [vmem:[#allocation3 + $0x88] sm:$0xff] }
  0x27   :  { %v82_v2 = vld [vmem:[#allocation3 + $0x90] sm:$0xff]  ;;  %v1135_v3 = vpack.c.bf16 %v81_v1, %v80_v0  ;;  %v83_v4 = vld [vmem:[#allocation3 + $0x98] sm:$0xff]  ;;  %v84_v6 = vld [vmem:[#allocation3 + $0xa0] sm:$0xff] }
  0x28   :  { %v1139_v5 = vpack.c.bf16 %v83_v4, %v82_v2  ;;  %v85_v7 = vld [vmem:[#allocation3 + $0xa8] sm:$0xff]  ;;  %v1500_v9 = vld [vmem:[%s1576_s0 + $0x1] sm:$0xff]  ;;  %v88_v13 = vld [vmem:[#allocation3 + $0xc0] sm:$0xff] }
  0x29   :  { %1136 = vmatprep.subr.bf16.mxu0 %v1135_v3  ;;  %v1143_v8 = vpack.c.bf16 %v85_v7, %v84_v6  ;;  %v86_v10 = vld [vmem:[#allocation3 + $0xb0] sm:$0xff]  ;;  %v87_v11 = vld [vmem:[#allocation3 + $0xb8] sm:$0xff]  ;;  %939 = vmatprep.mubr.f32.mxu0 %v1500_v9  ;;  %v89_v14 = vld [vmem:[#allocation3 + $0xc8] sm:$0xff] }
  0x2a   :  { %1138 = vmatpush3.bf16.msra.mxu0 %v1135_v3  ;;  %v1147_v12 = vpack.c.bf16 %v87_v11, %v86_v10  ;;  %v1151_v15 = vpack.c.bf16 %v89_v14, %v88_v13  ;;  %v90_v16 = vld [vmem:[#allocation3 + $0xd0] sm:$0xff]  ;;  %v91_v17 = vld [vmem:[#allocation3 + $0xd8] sm:$0xff]  ;;  %v92_v19 = vld [vmem:[#allocation3 + $0xe0] sm:$0xff] }
  0x2b   :  { %1140 = vmatprep.subr.bf16.mxu0 %v1139_v5  ;;  %v1155_v18 = vpack.c.bf16 %v91_v17, %v90_v16  ;;  %v93_v20 = vld [vmem:[#allocation3 + $0xe8] sm:$0xff]  ;;  %v435_v21 = vld [vmem:[#allocation6 + $0x80] sm:$0xff]  ;;  %v437_v23 = vld [vmem:[#allocation6 + $0x90] sm:$0xff] }
  0x2c   :  { %v436_v22 = vld [vmem:[#allocation6 + $0x88] sm:$0xff]  ;;  %v1159_v24 = vpack.c.bf16 %v93_v20, %v92_v19  ;;  %v94_v25 = vld [vmem:[#allocation3 + $0xf0] sm:$0xff]  ;;  %v438_v27 = vld [vmem:[#allocation6 + $0x98] sm:$0xff] }
  0x2d   :  { %v1231_v26 = vpack.c.bf16 %v436_v22, %v435_v21  ;;  %v95_v28 = vld [vmem:[#allocation3 + $0xf8] sm:$0xff]  ;;  %v1235_v29 = vpack.c.bf16 %v438_v27, %v437_v23  ;;  %v439_v30 = vld [vmem:[#allocation6 + $0xa0] sm:$0xff]  ;;  %v440_v31 = vld [vmem:[#allocation6 + $0xa8] sm:$0xff] }
  0x2e   :  { %1142 = vmatpush3.bf16.msra.mxu0 %v1139_v5  ;;  %v1163_v32 = vpack.c.bf16 %v95_v28, %v94_v25  ;;  %v63_v33 = vld [vmem:[#allocation3] sm:$0xff]  ;;  %v1239_v34 = vpack.c.bf16 %v440_v31, %v439_v30  ;;  %v64_v35 = vld [vmem:[#allocation3 + $0x8] sm:$0xff]  ;;  %v441_v36 = vld [vmem:[#allocation6 + $0xb0] sm:$0xff] }
  0x2f   :  { %1144 = vmatprep.subr.bf16.mxu0 %v1143_v8  ;;  %1232 = vmatprep.subr.bf16.mxu1 %v1231_v26  ;;  %v442_v37 = vld [vmem:[#allocation6 + $0xb8] sm:$0xff]  ;;  %v1167_v38 = vpack.c.bf16 %v64_v35, %v63_v33  ;;  %v65_v40 = vld [vmem:[#allocation3 + $0x10] sm:$0xff]  ;;  %v67_v45 = vld [vmem:[#allocation3 + $0x20] sm:$0xff] }
  0x30   :  { %1234 = vmatpush3.bf16.msra.mxu1 %v1231_v26  ;;  %v1243_v39 = vpack.c.bf16 %v442_v37, %v441_v36  ;;  %v66_v41 = vld [vmem:[#allocation3 + $0x18] sm:$0xff]  ;;  %v1511_v44 = vld [vmem:[%s1576_s0 + $0x19] sm:$0xff]  ;;  %v71_v53 = vld [vmem:[#allocation3 + $0x40] sm:$0xff] }
  0x31   :  { %1236 = vmatprep.subr.bf16.mxu1 %v1235_v29  ;;  %v1506_v42 = vld [vmem:[%s1576_s0 + $0x9] sm:$0xff]  ;;  %v1171_v43 = vpack.c.bf16 %v66_v41, %v65_v40  ;;  %v68_v46 = vld [vmem:[#allocation3 + $0x28] sm:$0xff]  ;;  %v1518_v47 = vld [vmem:[%s1576_s0 + $0x21] sm:$0xff] }
  0x32   :  { %1146 = vmatpush3.bf16.msra.mxu0 %v1143_v8  ;;  %v1175_v48 = vpack.c.bf16 %v68_v46, %v67_v45  ;;  %v59_v49 = vld [vmem:[%s1576_s0] sm:$0xff]  ;;  %v70_v51 = vld [vmem:[#allocation3 + $0x38] sm:$0xff]  ;;  %v72_v54 = vld [vmem:[#allocation3 + $0x48] sm:$0xff] }
  0x33   :  { %1148 = vmatprep.subr.bf16.mxu0 %v1147_v12  ;;  %v69_v50 = vld [vmem:[#allocation3 + $0x30] sm:$0xff]  ;;  %v1183_v55 = vpack.c.bf16 %v72_v54, %v71_v53  ;;  %v74_v57 = vld [vmem:[#allocation3 + $0x58] sm:$0xff]  ;;  %v75_v59 = vld [vmem:[#allocation3 + $0x60] sm:$0xff] }
  0x34   :  { %1238 = vmatpush3.bf16.msra.mxu1 %v1235_v29  ;;  %v1179_v52 = vpack.c.bf16 %v70_v51, %v69_v50  ;;  %v73_v56 = vld [vmem:[#allocation3 + $0x50] sm:$0xff]  ;;  %v76_v60 = vld [vmem:[#allocation3 + $0x68] sm:$0xff]  ;;  %v78_v63 = vld [vmem:[#allocation3 + $0x78] sm:$0xff]  ;;  %v1425_v51 = vmov 0.0  }
  0x35   :  { %1240 = vmatprep.subr.bf16.mxu1 %v1239_v34  ;;  %v1187_v58 = vpack.c.bf16 %v74_v57, %v73_v56  ;;  %v1191_v61 = vpack.c.bf16 %v76_v60, %v75_v59  ;;  %v77_v62 = vld [vmem:[#allocation3 + $0x70] sm:$0xff]  ;;  %v271_v1 = vld [vmem:[#allocation3 + $0x100] sm:$0xff]  ;;  %v272_v2 = vld [vmem:[#allocation3 + $0x108] sm:$0xff]  ;;  %402 = vst [vmem:[#allocation2] sm:$0x1] %v1425_v51 }
  0x36   :  { %1150 = vmatpush3.bf16.msra.mxu0 %v1147_v12  ;;  %v1195_v0 = vpack.c.bf16 %v78_v63, %v77_v62  ;;  %v1199_v3 = vpack.c.bf16 %v272_v2, %v271_v1  ;;  %v273_v4 = vld [vmem:[#allocation3 + $0x110] sm:$0xff]  ;;  %v274_v5 = vld [vmem:[#allocation3 + $0x118] sm:$0xff]  ;;  %v61_v8 = vld [vmem:[%s1576_s0 + $0x18] sm:$0xff]  ;;  %403 = vst [vmem:[#allocation2 + $0x18] sm:$0x1] %v1425_v51 }
  0x37   :  { %1152 = vmatprep.subr.bf16.mxu0 %v1151_v15  ;;  %v60_v6 = vld [vmem:[%s1576_s0 + $0x8] sm:$0xff]  ;;  %v1203_v7 = vpack.c.bf16 %v274_v5, %v273_v4  ;;  %v275_v10 = vld [vmem:[#allocation3 + $0x120] sm:$0xff]  ;;  %v276_v11 = vld [vmem:[#allocation3 + $0x128] sm:$0xff]  ;;  %404 = vst [vmem:[#allocation2 + $0x11] sm:$0x1] %v1425_v51 }
  0x38   :  { %1242 = vmatpush3.bf16.msra.mxu1 %v1239_v34  ;;  %v62_v12 = vld [vmem:[%s1576_s0 + $0x20] sm:$0xff]  ;;  %v1207_v13 = vpack.c.bf16 %v276_v11, %v275_v10  ;;  %v278_v16 = vld [vmem:[#allocation3 + $0x138] sm:$0xff]  ;;  %v280_v19 = vld [vmem:[#allocation3 + $0x148] sm:$0xff]  ;;  %405 = vst [vmem:[#allocation2 + $0x29] sm:$0x1] %v1425_v51 }
  0x39   :  { %1244 = vmatprep.subr.bf16.mxu1 %v1243_v39  ;;  %v266_v14 = vld [vmem:[%s1576_s0 + $0x2] sm:$0xff]  ;;  %v284_v25 = vld [vmem:[#allocation3 + $0x168] sm:$0xff]  ;;  %v267_v30 = vld [vmem:[%s1576_s0 + $0xa] sm:$0xff] }
  0x3a   :  { %1154 = vmatpush3.bf16.msra.mxu0 %v1151_v15  ;;  %v277_v15 = vld [vmem:[#allocation3 + $0x130] sm:$0xff]  ;;  %v282_v22 = vld [vmem:[#allocation3 + $0x158] sm:$0xff]  ;;  %v443_v33 = vld [vmem:[#allocation6 + $0xc0] sm:$0xff] }
  0x3b   :  { %1156 = vmatprep.subr.bf16.mxu0 %v1155_v18  ;;  %v1211_v17 = vpack.c.bf16 %v278_v16, %v277_v15  ;;  %v281_v21 = vld [vmem:[#allocation3 + $0x150] sm:$0xff]  ;;  %v286_v28 = vld [vmem:[#allocation3 + $0x178] sm:$0xff]  ;;  %v444_v34 = vld [vmem:[#allocation6 + $0xc8] sm:$0xff] }
  0x3c   :  { %1246 = vmatpush3.bf16.msra.mxu1 %v1243_v39  ;;  %v1219_v23 = vpack.c.bf16 %v282_v22, %v281_v21  ;;  %v285_v27 = vld [vmem:[#allocation3 + $0x170] sm:$0xff]  ;;  %v1247_v35 = vpack.c.bf16 %v444_v34, %v443_v33  ;;  %v446_v37 = vld [vmem:[#allocation6 + $0xd8] sm:$0xff]  ;;  %v447_v39 = vld [vmem:[#allocation6 + $0xe0] sm:$0xff] }
  0x3d   :  { %v1227_v29 = vpack.c.bf16 %v286_v28, %v285_v27  ;;  %v268_v31 = vld [vmem:[%s1576_s0 + $0x1a] sm:$0xff]  ;;  %v450_v45 = vld [vmem:[#allocation6 + $0xf8] sm:$0xff] }
  0x3e   :  { %1158 = vmatpush3.bf16.msra.mxu0 %v1155_v18  ;;  %v279_v18 = vld [vmem:[#allocation3 + $0x140] sm:$0xff]  ;;  %1248 = vmatprep.subr.bf16.mxu1 %v1247_v35  ;;  %v445_v36 = vld [vmem:[#allocation6 + $0xd0] sm:$0xff]  ;;  %v448_v40 = vld [vmem:[#allocation6 + $0xe8] sm:$0xff] }
  0x3f   :  { %1160 = vmatprep.subr.bf16.mxu0 %v1159_v24  ;;  %v1215_v20 = vpack.c.bf16 %v280_v19, %v279_v18  ;;  %v1255_v41 = vpack.c.bf16 %v448_v40, %v447_v39  ;;  %v784_v54 = vld [vmem:[%s1579_s3] ss:$0 sm:$0xff]  ;;  %v417_v62 = vld [vmem:[#allocation6 + $0x18] sm:$0xff]  ;;  %v423_v18 = vld [vmem:[#allocation6 + $0x48] sm:$0xff] }
  0x40   :  { %1250 = vmatpush3.bf16.msra.mxu1 %v1247_v35  ;;  %v425_v21 = vld [vmem:[#allocation6 + $0x58] sm:$0xff]  ;;  %v636_v51 = vld [vmem:[#allocation6 + $0x150] sm:$0xff] }
  0x41   :  { %v429_v27 = vld [vmem:[#allocation6 + $0x78] sm:$0xff] }
  0x42   :  { %1162 = vmatpush3.bf16.msra.mxu0 %v1159_v24  ;;  %v283_v24 = vld [vmem:[#allocation3 + $0x160] sm:$0xff]  ;;  %v629_v33 = vld [vmem:[#allocation6 + $0x118] sm:$0xff] }
  0x43   :  { %1164 = vmatprep.subr.bf16.mxu0 %v1163_v32  ;;  %v1223_v26 = vpack.c.bf16 %v284_v25, %v283_v24  ;;  %v427_v24 = vld [vmem:[#allocation6 + $0x68] sm:$0xff] }
  0x46   :  { %1166 = vmatpush3.bf16.msra.mxu0 %v1163_v32  ;;  %v269_v32 = vld [vmem:[%s1576_s0 + $0x22] sm:$0xff] }
  0x47   :  { %1168 = vmatprep.subr.bf16.mxu0 %v1167_v38 }
  0x49   :  { %940 = vmatmul.mubr.f32.vlgmr.msra.gmra.mrb[0].mxu0 %v1506_v42 }
  0x4a   :  { %1170 = vmatpush3.bf16.msra.mxu0 %v1167_v38  ;;  %942 = vmatprep.mubr.f32.mxu0 %v1511_v44  ;;  %v1251_v38 = vpack.c.bf16 %v446_v37, %v445_v36  ;;  %v630_v36 = vld [vmem:[#allocation6 + $0x120] sm:$0xff]  ;;  %v631_v37 = vld [vmem:[#allocation6 + $0x128] sm:$0xff] }
  0x4b   :  { %1172 = vmatprep.subr.bf16.mxu0 %v1171_v43  ;;  %v1303_v39 = vpack.c.bf16 %v631_v37, %v630_v36 }
  0x4c   :  { %1252 = vmatprep.subr.bf16.mxu1 %v1251_v38 }
  0x4d   :  { %943 = vmatmul.mubr.f32.gmra.mrb[2].mxu0 %v1518_v47  ;;  %1254 = vmatpush3.bf16.msra.mxu1 %v1251_v38 }
  0x4e   :  { %1174 = vmatpush3.bf16.msra.mxu0 %v1171_v43  ;;  %977 = vmatprep.mubr.f32.mxu0 %v59_v49  ;;  %v449_v43 = vld [vmem:[#allocation6 + $0xf0] sm:$0xff]  ;;  %v415_v49 = vld [vmem:[#allocation6 + $0x8] sm:$0xff] }
  0x4f   :  { %1176 = vmatprep.subr.bf16.mxu0 %v1175_v48  ;;  %1256 = vmatprep.subr.bf16.mxu1 %v1255_v41  ;;  %v1259_v46 = vpack.c.bf16 %v450_v45, %v449_v43  ;;  %v633_v43 = vld [vmem:[#allocation6 + $0x138] sm:$0xff] }
  0x51   :  { %1258 = vmatpush3.bf16.msra.mxu1 %v1255_v41  ;;  %v632_v41 = vld [vmem:[#allocation6 + $0x130] sm:$0xff] }
  0x52   :  { %1178 = vmatpush3.bf16.msra.mxu0 %v1175_v48  ;;  %1260 = vmatprep.subr.bf16.mxu1 %v1259_v46  ;;  %v414_v48 = vld [vmem:[#allocation6] sm:$0xff] }
  0x53   :  { %1180 = vmatprep.subr.bf16.mxu0 %v1179_v52  ;;  %v1263_v50 = vpack.c.bf16 %v415_v49, %v414_v48  ;;  %v634_v48 = vld [vmem:[#allocation6 + $0x140] sm:$0xff]  ;;  %v635_v49 = vld [vmem:[#allocation6 + $0x148] sm:$0xff] }
  0x55   :  { %1262 = vmatpush3.bf16.msra.mxu1 %v1259_v46  ;;  %v1307_v46 = vpack.c.bf16 %v633_v43, %v632_v41 }
  0x56   :  { %1182 = vmatpush3.bf16.msra.mxu0 %v1179_v52  ;;  %1264 = vmatprep.subr.bf16.mxu1 %v1263_v50  ;;  %v783_v52 = vld [vmem:[%s1578_s2] ss:$0 sm:$0xff] }
  0x57   :  { %1184 = vmatprep.subr.bf16.mxu0 %v1183_v55 }
  0x5a   :  { %1186 = vmatpush3.bf16.msra.mxu0 %v1183_v55 }
  0x5b   :  { %1188 = vmatprep.subr.bf16.mxu0 %v1187_v58 }
  0x5e   :  { %1190 = vmatpush3.bf16.msra.mxu0 %v1187_v58 }
  0x5f   :  { %1192 = vmatprep.subr.bf16.mxu0 %v1191_v61 }
  0x62   :  { %1194 = vmatpush3.bf16.msra.mxu0 %v1191_v61  ;;  %v416_v61 = vld [vmem:[#allocation6 + $0x10] sm:$0xff] }
  0x63   :  { %1196 = vmatprep.subr.bf16.mxu0 %v1195_v0  ;;  %v1267_v5 = vpack.c.bf16 %v417_v62, %v416_v61 }
  0x66   :  { %1198 = vmatpush3.bf16.msra.mxu0 %v1195_v0 }
  0x67   :  { %1200 = vmatprep.subr.bf16.mxu0 %v1199_v3 }
  0x69   :  { %978 = vmatmul.mubr.f32.vlgmr.msra.gmra.mrb[0].mxu0 %v60_v6 }
  0x6a   :  { %1202 = vmatpush3.bf16.msra.mxu0 %v1199_v3  ;;  %980 = vmatprep.mubr.f32.mxu0 %v61_v8  ;;  %v419_v8 = vld [vmem:[#allocation6 + $0x28] sm:$0xff] }
  0x6b   :  { %1204 = vmatprep.subr.bf16.mxu0 %v1203_v7 }
  0x6d   :  { %981 = vmatmul.mubr.f32.gmra.mrb[2].mxu0 %v62_v12 }
  0x6e   :  { %1206 = vmatpush3.bf16.msra.mxu0 %v1203_v7  ;;  %1015 = vmatprep.mubr.f32.mxu0 %v266_v14  ;;  %v418_v7 = vld [vmem:[#allocation6 + $0x20] sm:$0xff]  ;;  %v421_v14 = vld [vmem:[#allocation6 + $0x38] sm:$0xff] }
  0x6f   :  { %1208 = vmatprep.subr.bf16.mxu0 %v1207_v13  ;;  %v1271_v12 = vpack.c.bf16 %v419_v8, %v418_v7 }
  0x72   :  { %1210 = vmatpush3.bf16.msra.mxu0 %v1207_v13  ;;  %v420_v13 = vld [vmem:[#allocation6 + $0x30] sm:$0xff] }
  0x73   :  { %1212 = vmatprep.subr.bf16.mxu0 %v1211_v17  ;;  %v1275_v16 = vpack.c.bf16 %v421_v14, %v420_v13 }
  0x76   :  { %1214 = vmatpush3.bf16.msra.mxu0 %v1211_v17  ;;  %v422_v17 = vld [vmem:[#allocation6 + $0x40] sm:$0xff] }
  0x77   :  { %1216 = vmatprep.subr.bf16.mxu0 %v1215_v20  ;;  %v1279_v19 = vpack.c.bf16 %v423_v18, %v422_v17 }
  0x7a   :  { %1218 = vmatpush3.bf16.msra.mxu0 %v1215_v20  ;;  %v424_v20 = vld [vmem:[#allocation6 + $0x50] sm:$0xff] }
  0x7b   :  { %1220 = vmatprep.subr.bf16.mxu0 %v1219_v23  ;;  %v1283_v22 = vpack.c.bf16 %v425_v21, %v424_v20 }
  0x7e   :  { %1222 = vmatpush3.bf16.msra.mxu0 %v1219_v23  ;;  %v426_v23 = vld [vmem:[#allocation6 + $0x60] sm:$0xff] }
  0x7f   :  { %1224 = vmatprep.subr.bf16.mxu0 %v1223_v26  ;;  %v1287_v25 = vpack.c.bf16 %v427_v24, %v426_v23 }
  0x82   :  { %1226 = vmatpush3.bf16.msra.mxu0 %v1223_v26  ;;  %v428_v26 = vld [vmem:[#allocation6 + $0x70] sm:$0xff] }
  0x83   :  { %1228 = vmatprep.subr.bf16.mxu0 %v1227_v29  ;;  %v1291_v28 = vpack.c.bf16 %v429_v27, %v428_v26 }
  0x86   :  { %1230 = vmatpush3.bf16.msra.mxu0 %v1227_v29  ;;  %v626_v29 = vld [vmem:[#allocation6 + $0x100] sm:$0xff] }
  0x89   :  { %1016 = vmatmul.mubr.f32.vlgmr.msra.gmra.mrb[0].mxu0 %v267_v30  ;;  %v627_v30 = vld [vmem:[#allocation6 + $0x108] sm:$0xff] }
  0x8a   :  { %1018 = vmatprep.mubr.f32.mxu0 %v268_v31  ;;  %v1295_v31 = vpack.c.bf16 %v627_v30, %v626_v29 }
  0x8d   :  { %1019 = vmatmul.mubr.f32.gmra.mrb[2].mxu0 %v269_v32  ;;  %v628_v32 = vld [vmem:[#allocation6 + $0x110] sm:$0xff] }
  0x8e   :  { %v1299_v34 = vpack.c.bf16 %v629_v33, %v628_v32 }
 0x15c   :  { %v1017_v53 = vpop.f32.mrb[0].mxu0 }
 0x15d   :  { %v384_v55 = vmul.f32 %v1017_v53, %v783_v52  ;;  %v353_v56 = vpop.f32.mrb[1].mxu0 }
 0x15e   :  { %v383_v57 = vmul.f32 %v783_v52, %v353_v56 }
 0x15f   :  { %v395_v58 = vadd.f32 %v784_v54, %v384_v55  ;;  %v639_v55 = vld [vmem:[#allocation6 + $0x168] sm:$0xff] }
 0x160   :  { %v394_v59 = vadd.f32 %v784_v54, %v383_v57  ;;  %v1020_v60 = vpop.f32.mrb[2].mxu0  ;;  %v640_v57 = vld [vmem:[#allocation6 + $0x170] sm:$0xff] }
 0x161   :  { %v399_v63 = vmax.f32 %v395_v58, 0.0  ;;  %v386_v0 = vmul.f32 %v1020_v60, %v783_v52  ;;  %v363_v1 = vpop.f32.mrb[3].mxu0  ;;  %v641_v58 = vld [vmem:[#allocation6 + $0x178] sm:$0xff] }
 0x162   :  { %v398_v2 = vmax.f32 %v394_v59, 0.0  ;;  %v385_v3 = vmul.f32 %v783_v52, %v363_v1  ;;  %v637_v52 = vld [vmem:[#allocation6 + $0x158] sm:$0xff]  ;;  %v1323_v59 = vpack.c.bf16 %v641_v58, %v640_v57  ;;  %v786_v1 = vld [vmem:[%s1582_s6] ss:$0 sm:$0xff] }
 0x163   :  { %407 = vst [vmem:[#allocation2 + $0x9] sm:$0xff] %v399_v63  ;;  %v397_v4 = vadd.f32 %v784_v54, %v386_v0  ;;  %v1315_v53 = vpack.c.bf16 %v637_v52, %v636_v51 }
 0x164   :  { %406 = vst [vmem:[#allocation2 + $0x1] sm:$0xff] %v398_v2  ;;  %v396_v6 = vadd.f32 %v784_v54, %v385_v3  ;;  %1053 = vmatprep.mubr.f32.mxu1 %v398_v2  ;;  %v638_v54 = vld [vmem:[#allocation6 + $0x160] sm:$0xff] }
 0x165   :  { %v401_v10 = vmax.f32 %v397_v4, 0.0  ;;  %1054 = vmatmul.mubr.f32.vlgmr.msra.gmra.mrb[0].mxu1 %v399_v63  ;;  %v1319_v56 = vpack.c.bf16 %v639_v55, %v638_v54  ;;  %v785_v63 = vld [vmem:[%s1581_s5] ss:$0 sm:$0xff]  ;;  %s1426_s5 = smov [#allocation8]  }
 0x166   :  { %v400_v11 = vmax.f32 %v396_v6, 0.0  ;;  %1266 = vmatpush3.bf16.msra.mxu1 %v1263_v50  ;;  %v1311_v50 = vpack.c.bf16 %v635_v49, %v634_v48  ;;  %s770_s6 = sshll.u32 %s1426_s5, 4  ;;  %s771_s6 = int_to_ptr.vmem [resolvable:$true] %s770_s6 }
 0x167   :  { %409 = vst [vmem:[#allocation2 + $0x21] sm:$0xff] %v401_v10  ;;  %1268 = vmatprep.subr.bf16.mxu1 %v1267_v5  ;;  %s1393_s8 = scalar_lea.vmem %s771_s6, 512  ;;  %p1398_p3 = scmp.lt.s32.totalorder %s771_s6, %s771_s6 }
 0x168   :  { %408 = vst [vmem:[#allocation2 + $0x19] sm:$0xff] %v400_v11  ;;  %1056 = vmatprep.mubr.f32.mxu1 %v400_v11  ;;  %p1394_p2 = scmp.ne.s32.totalorder %s771_s6, %s1393_s8  ;;  %p1399_p4 = scmp.lt.s32.totalorder %s1393_s8, %s1393_s8 }
 0x169   :  { %1057 = vmatmul.mubr.f32.gmra.mrb[2].mxu1 %v401_v10 }
 0x16a   :  { %1270 = vmatpush3.bf16.msra.mxu1 %v1267_v5  ;;  %v622_v60 = vld [vmem:[#allocation2 + $0xa] sm:$0xff]  ;;  %p1400_p5 = por %p1399_p4, %p1398_p3 }
 0x16b   :  { %v410_v15 = vld [vmem:[#allocation2] sm:$0xff]  ;;  %1272 = vmatprep.subr.bf16.mxu1 %v1271_v12  ;;  %v411_v35 = vld [vmem:[#allocation2 + $0x8] sm:$0xff] }
 0x16c   :  { %1091 = vmatprep.mubr.f32.mxu1 %v410_v15  ;;  %v621_v45 = vld [vmem:[#allocation2 + $0x2] sm:$0xff]  ;;  %p1401_p6 = pnand %p1400_p5, %p1394_p2 }
 0x16e   :  { %1274 = vmatpush3.bf16.msra.mxu1 %v1271_v12  ;;  %v624_v62 = vld [vmem:[#allocation2 + $0x22] sm:$0xff] }
 0x16f   :  { %1276 = vmatprep.subr.bf16.mxu1 %v1275_v16  ;;  %v412_v38 = vld [vmem:[#allocation2 + $0x18] sm:$0xff]  ;;  %v413_v40 = vld [vmem:[#allocation2 + $0x20] sm:$0xff] }
 0x170   :  { %v623_v61 = vld [vmem:[#allocation2 + $0x1a] sm:$0xff] }
 0x172   :  { %1278 = vmatpush3.bf16.msra.mxu1 %v1275_v16 }
 0x173   :  { %1280 = vmatprep.subr.bf16.mxu1 %v1279_v19 }
 0x176   :  { %1282 = vmatpush3.bf16.msra.mxu1 %v1279_v19 }
 0x177   :  { %1284 = vmatprep.subr.bf16.mxu1 %v1283_v22 }
 0x17a   :  { %1286 = vmatpush3.bf16.msra.mxu1 %v1283_v22 }
 0x17b   :  { %1288 = vmatprep.subr.bf16.mxu1 %v1287_v25 }
 0x17e   :  { %1290 = vmatpush3.bf16.msra.mxu1 %v1287_v25 }
 0x17f   :  { %1292 = vmatprep.subr.bf16.mxu1 %v1291_v28 }
 0x182   :  { %1294 = vmatpush3.bf16.msra.mxu1 %v1291_v28 }
 0x183   :  { %1296 = vmatprep.subr.bf16.mxu1 %v1295_v31 }
 0x185   :  { %1092 = vmatmul.mubr.f32.vlgmr.msra.gmra.mrb[0].mxu1 %v411_v35 }
 0x186   :  { %1094 = vmatprep.mubr.f32.mxu1 %v412_v38  ;;  %1298 = vmatpush3.bf16.msra.mxu1 %v1295_v31 }
 0x187   :  { %1300 = vmatprep.subr.bf16.mxu1 %v1299_v34 }
 0x189   :  { %1095 = vmatmul.mubr.f32.gmra.mrb[2].mxu1 %v413_v40 }
 0x18a   :  { %1302 = vmatpush3.bf16.msra.mxu1 %v1299_v34  ;;  %1129 = vmatprep.mubr.f32.mxu1 %v621_v45 }
 0x18b   :  { %1304 = vmatprep.subr.bf16.mxu1 %v1303_v39 }
 0x18e   :  { %1306 = vmatpush3.bf16.msra.mxu1 %v1303_v39 }
 0x18f   :  { %1308 = vmatprep.subr.bf16.mxu1 %v1307_v46 }
 0x192   :  { %1310 = vmatpush3.bf16.msra.mxu1 %v1307_v46 }
 0x193   :  { %1312 = vmatprep.subr.bf16.mxu1 %v1311_v50 }
 0x196   :  { %1314 = vmatpush3.bf16.msra.mxu1 %v1311_v50 }
 0x197   :  { %1316 = vmatprep.subr.bf16.mxu1 %v1315_v53 }
 0x19a   :  { %1318 = vmatpush3.bf16.msra.mxu1 %v1315_v53 }
 0x19b   :  { %1320 = vmatprep.subr.bf16.mxu1 %v1319_v56 }
 0x19e   :  { %1322 = vmatpush3.bf16.msra.mxu1 %v1319_v56 }
 0x19f   :  { %1324 = vmatprep.subr.bf16.mxu1 %v1323_v59 }
 0x1a2   :  { %1326 = vmatpush3.bf16.msra.mxu1 %v1323_v59 }
 0x1a5   :  { %1130 = vmatmul.mubr.f32.vlgmr.msra.gmra.mrb[0].mxu1 %v622_v60 }
 0x1a6   :  { %1132 = vmatprep.mubr.f32.mxu1 %v623_v61 }
 0x1a9   :  { %1133 = vmatmul.mubr.f32.gmra.mrb[2].mxu1 %v624_v62 }
 0x278   :  { %v1131_v0 = vpop.f32.mrb[0].mxu1 }
 0x279   :  { %v739_v2 = vmul.f32 %v1131_v0, %v785_v63  ;;  %v708_v3 = vpop.f32.mrb[1].mxu1 }
 0x27a   :  { %v738_v4 = vmul.f32 %v785_v63, %v708_v3 }
 0x27b   :  { %v750_v5 = vadd.f32 %v786_v1, %v739_v2 }
 0x27c   :  { %v749_v6 = vadd.f32 %v786_v1, %v738_v4  ;;  %v1134_v7 = vpop.f32.mrb[2].mxu1 }
 0x27d   :  { %v754_v8 = vadd.f32 %v750_v5, %v1506_v42  ;;  %v741_v10 = vmul.f32 %v1134_v7, %v785_v63  ;;  %v718_v11 = vpop.f32.mrb[3].mxu1 }
 0x27e   :  { %v753_v12 = vadd.f32 %v749_v6, %v1500_v9  ;;  %v740_v13 = vmul.f32 %v785_v63, %v718_v11 }
 0x27f   :  { %v758_v14 = vmax.f32 %v754_v8, 0.0  ;;  %v752_v15 = vadd.f32 %v786_v1, %v741_v10 }
 0x280   :  { %v757_v16 = vmax.f32 %v753_v12, 0.0  ;;  %v751_v17 = vadd.f32 %v786_v1, %v740_v13 }
 0x281   :  { %762 = vst [vmem:[#allocation8 + $0x8] sm:$0xff] %v758_v14  ;;  %v756_v18 = vadd.f32 %v752_v15, %v1518_v47 }
 0x282   :  { %761 = vst [vmem:[#allocation8] sm:$0xff] %v757_v16  ;;  %v755_v19 = vadd.f32 %v751_v17, %v1511_v44 }
 0x283   :  { %v760_v20 = vmax.f32 %v756_v18, 0.0 }
 0x284   :  { %v759_v21 = vmax.f32 %v755_v19, 0.0 }
 0x285   :  { %764 = vst [vmem:[#allocation8 + $0x18] sm:$0xff] %v760_v20 }
 0x286   :  { %763 = vst [vmem:[#allocation8 + $0x10] sm:$0xff] %v759_v21 }
 0x287   :  { %1404 = shalt.err (!%p1401_p6)
}
 0x288   :  { %s1405_s13 = scalar_lea.hbm %s1583_s7, 512 }
 0x289   :  { %p1406_p7 = scmp.ne.s32.totalorder %s1583_s7, %s1405_s13  ;;  %p1409_p8 = scmp.lt.u32.totalorder %s1405_s13, %s1583_s7 }
 0x28b   :  { %p1411_p9 = pnand %p1409_p8, %p1406_p7 }
 0x28d   :  { %1414 = shalt.err (!%p1411_p9)
}
 0x28e   :  { %776 = dma.vmem_to_hbm [thread:$0]  %s771_s6, 512, %s1583_s7, [#allocation5], %s1422_s11, %s1422_s11, %s1423_s12  }
 0x28f   :  { %1419 = dma.done.wait [#allocation5], 512  }
 0x290   :  { %1420 = vsyncadd [#allocation5], 4294966784 }
 0x291   :  { %780 = vsyncpa [#allocation4], 1 }
 0x292   :  { %781 = vsyncpa [#allocation7], 1 }
 0x293   :  { %782 = vsyncpa [#allocation5], 1 }

</bundles_post_ra>
